<compile_context>
chip_gen: v5e
topology: v5e:2x2
jax: 0.10.0
libtpu: 0.0.40
codegen_flags: <defaults>
</compile_context>

<pallas_src>
import functools

import jax
import jax.numpy as jnp
from jax import lax
from jax.experimental import pallas as pl
from jax.experimental.pallas import tpu as pltpu


def _round_up(x, m):
    return ((x + m - 1) // m) * m


# ----------------------------- fused Pallas kernel -----------------------------

def _fused_box_head_kernel(x_ref, protos_ref,
                           w6_ref, b6_ref, w7_ref, b7_ref,
                           wq_ref, bq_ref, wk_ref, bk_ref, wv_ref, bv_ref,
                           wpx_ref, wph_ref, bp_ref,
                           feat_ref, head_ref):
    """fc6 -> relu -> fc7 -> relu -> single-head cross-attn -> fused predictor."""
    f32 = jnp.float32
    bf16 = jnp.bfloat16

    # --- FPN2MLP feature extractor (fc6 / fc7), bf16 MXU, f32 accumulation ---
    h = jnp.dot(x_ref[...].astype(bf16), w6_ref[...], preferred_element_type=f32)
    h = jnp.maximum(h + b6_ref[...], 0.0)
    x = jnp.dot(h.astype(bf16), w7_ref[...], preferred_element_type=f32)
    x = jnp.maximum(x + b7_ref[...], 0.0)
    x16 = x.astype(bf16)

    # --- roi_multmodel stand-in: single-head cross attention vs. prototypes ---
    # NOTE: at toy sizes there is a single grid step; for large N the K/V
    # projections (prototype-only, row-tile invariant) would be hoisted.
    protos16 = protos_ref[...].astype(bf16)
    q = jnp.dot(x16, wq_ref[...], preferred_element_type=f32) + bq_ref[...]   # 1/sqrt(d) folded into wq/bq
    k = jnp.dot(protos16, wk_ref[...], preferred_element_type=f32) + bk_ref[...]
    v = jnp.dot(protos16, wv_ref[...], preferred_element_type=f32) + bv_ref[...]
    # contract last axes of q and k directly (no explicit k.T relayout)
    s = lax.dot_general(q.astype(bf16), k.astype(bf16),
                        (((1,), (1,)), ((), ())), preferred_element_type=f32)
    m = jnp.max(s, axis=-1, keepdims=True)
    p = jnp.exp(s - m)
    attn = p * pl.reciprocal(jnp.sum(p, axis=-1, keepdims=True), approx=True)
    x_h = jnp.dot(attn.astype(bf16), v.astype(bf16), preferred_element_type=f32)
    xh16 = x_h.astype(bf16)

    # --- concatenated features written as two lane-aligned halves (no HBM concat) ---
    hidden = x.shape[1]
    feat_ref[:, :hidden] = x
    feat_ref[:, hidden:] = x_h

    # --- fused predictor: [cls | box] in one lane-dense padded slab ---
    head_ref[...] = (jnp.dot(x16, wpx_ref[...], preferred_element_type=f32)
                     + jnp.dot(xh16, wph_ref[...], preferred_element_type=f32)
                     + bp_ref[...])


# --------------------------- pallas_call wrapper ---------------------------

def fused_box_head(x_pad, protos, params, *, row_tile, out_pad):
    n_pad, in_pad = x_pad.shape
    hidden = params["w7"].shape[1]
    grid = (n_pad // row_tile,)

    def rows(i):
        return (i, 0)

    def whole(i):
        return (0, 0)

    weight_keys = ("w6", "b6", "w7", "b7",
                   "wq", "bq", "wk", "bk", "wv", "bv",
                   "wpx", "wph", "bp")
    w_args = [params[k] for k in weight_keys]

    in_specs = ([pl.BlockSpec((row_tile, in_pad), rows),
                 pl.BlockSpec(protos.shape, whole)]
                + [pl.BlockSpec(a.shape, whole) for a in w_args])
    out_specs = [pl.BlockSpec((row_tile, 2 * hidden), rows),
                 pl.BlockSpec((row_tile, out_pad), rows)]
    out_shape = (jax.ShapeDtypeStruct((n_pad, 2 * hidden), jnp.float32),
                 jax.ShapeDtypeStruct((n_pad, out_pad), jnp.float32))

    return pl.pallas_call(
        _fused_box_head_kernel,
        grid=grid,
        in_specs=in_specs,
        out_specs=out_specs,
        out_shape=out_shape,
        compiler_params=pltpu.CompilerParams(
            dimension_semantics=("parallel",)),   # ROI row tiles are independent
    )(x_pad, protos, *w_args)


# ------------------------------- JAX glue ----------------------------------

def roi_align(features, rois, pool_size):
    """Simplified single-level ROIAlign (bilinear, 1 sample/bin).

    features: (B, C, H, W) float32, NCHW
    rois:     (N, 5) float32, (batch_idx, x1, y1, x2, y2) in feature-map coords
    returns:  (N, C, P, P)
    """
    # TODO(synk): ROIAlign is a data-dependent bilinear gather (no clean static
    # BlockSpec); kept in plain JAX. No spatial_scale / sampling_ratio parity.
    _, _, H, W = features.shape
    P = pool_size

    def one_roi(roi):
        b = roi[0].astype(jnp.int32)
        x1, y1, x2, y2 = roi[1], roi[2], roi[3], roi[4]
        xs = x1 + (jnp.arange(P, dtype=jnp.float32) + 0.5) * (x2 - x1) / P
        ys = y1 + (jnp.arange(P, dtype=jnp.float32) + 0.5) * (y2 - y1) / P
        xs = jnp.clip(xs, 0.0, W - 1.0)
        ys = jnp.clip(ys, 0.0, H - 1.0)
        x0 = jnp.floor(xs).astype(jnp.int32)
        y0 = jnp.floor(ys).astype(jnp.int32)
        x1i = jnp.minimum(x0 + 1, W - 1)
        y1i = jnp.minimum(y0 + 1, H - 1)
        wx = (xs - x0.astype(jnp.float32))[None, None, :]
        wy = (ys - y0.astype(jnp.float32))[None, :, None]
        fmap = features[b]  # (C, H, W)

        def gather(yi, xi):
            return fmap[:, yi[:, None], xi[None, :]]  # (C, P, P)

        top = gather(y0, x0) * (1 - wx) + gather(y0, x1i) * wx
        bot = gather(y1i, x0) * (1 - wx) + gather(y1i, x1i) * wx
        return top * (1 - wy) + bot * wy

    return jax.vmap(one_roi)(rois)


class ROIBoxHeadPallas:
    """Inference-path ROIBoxHead with a single fused Pallas kernel."""

    def __init__(self, key, in_channels=4, pool_size=4, hidden=128, num_classes=8):
        self.pool_size = pool_size
        self.hidden = hidden
        self.num_classes = num_classes
        in_dim = in_channels * pool_size * pool_size
        self.in_pad = _round_up(in_dim, 128)              # lane-dense fc6 contraction
        self.out_dim = num_classes + 4 * num_classes      # cls | box
        self.out_pad = _round_up(self.out_dim, 128)       # lane-dense predictor output

        ks = jax.random.split(key, 9)
        s = 0.02
        f32, bf16 = jnp.float32, jnp.bfloat16

        # feature extractor (fc6, fc7) — fc6 zero-padded on the input dim
        w6 = s * jax.random.normal(ks[0], (in_dim, hidden), f32)
        w6 = jnp.zeros((self.in_pad, hidden), f32).at[:in_dim].set(w6)
        w7 = s * jax.random.normal(ks[1], (hidden, hidden), f32)

        # roi_multmodel (cross-attention enhancement)
        # TODO(synk): exact MULTModel architecture is external; single-head
        # cross-attention stand-in (no output projection, no multi-head).
        scale = 1.0 / jnp.sqrt(jnp.float32(hidden))       # folded into wq / bq
        wq = (s * jax.random.normal(ks[2], (hidden, hidden), f32)) * scale
        wk = s * jax.random.normal(ks[3], (hidden, hidden), f32)
        wv = s * jax.random.normal(ks[4], (hidden, hidden), f32)

        # predictor (cls_score, bbox_pred) fused into one padded weight,
        # split into the halves applied to x and x_hance (concat eliminated).
        wc = s * jax.random.normal(ks[5], (2 * hidden, num_classes), f32)
        wb = s * jax.random.normal(ks[6], (2 * hidden, 4 * num_classes), f32)
        wp = jnp.concatenate([wc, wb], axis=1)                      # (2h, out_dim)
        wp = jnp.zeros((2 * hidden, self.out_pad), f32).at[:, :self.out_dim].set(wp)
        bp = jnp.zeros((1, self.out_pad), f32)

        self.params = {
            "w6": w6.astype(bf16), "b6": jnp.zeros((1, hidden), f32),
            "w7": w7.astype(bf16), "b7": jnp.zeros((1, hidden), f32),
            "wq": wq.astype(bf16), "bq": jnp.zeros((1, hidden), f32) * scale,
            "wk": wk.astype(bf16), "bk": jnp.zeros((1, hidden), f32),
            "wv": wv.astype(bf16), "bv": jnp.zeros((1, hidden), f32),
            "wpx": wp[:hidden].astype(bf16),
            "wph": wp[hidden:].astype(bf16),
            "bp": bp,
        }

    @functools.partial(jax.jit, static_argnums=0)
    def __call__(self, features, rois, prototypes):
        # features: (B, C, H, W) NCHW; rois: (N, 5); prototypes: (K, hidden)
        pooled = roi_align(features, rois, self.pool_size)          # (N, C, P, P)
        flat = pooled.reshape(pooled.shape[0], -1)                  # (N, C*P*P)
        n, in_dim = flat.shape

        # pad rows to a sublane-friendly tile and the feature dim to 128 lanes
        row_tile = min(256, _round_up(n, 8))
        n_pad = _round_up(n, row_tile)
        x_pad = jnp.zeros((n_pad, self.in_pad), jnp.float32)
        x_pad = x_pad.at[:n, :in_dim].set(flat)

        feat, head = fused_box_head(x_pad, prototypes, self.params,
                                    row_tile=row_tile, out_pad=self.out_pad)

        x_cat = feat[:n]                                            # (N, 2*hidden)
        class_logits = head[:n, :self.num_classes]                  # (N, C)
        box_regression = head[:n, self.num_classes:self.out_dim]    # (N, 4C)
        # Inference return: (x, class_logits, box_regression); box post-processing
        # (decode + NMS) and training losses are outside the kernel scope.
        return x_cat, class_logits, box_regression


if __name__ == "__main__":
    key = jax.random.PRNGKey(0)
    k_feat, k_box, k_proto, k_param = jax.random.split(key, 4)

    B, C, H, W = 2, 4, 16, 16
    N_ROI, POOL, HIDDEN, NUM_CLASSES, K_PROTO = 8, 4, 128, 8, 16

    # NCHW feature maps (matches PyTorch conv outputs fed to the box head)
    features = jax.random.normal(k_feat, (B, C, H, W), jnp.float32)

    # proposals: (batch_idx, x1, y1, x2, y2) in feature-map coordinates
    xy = jax.random.uniform(k_box, (N_ROI, 4), minval=0.0, maxval=float(W - 1))
    x1 = jnp.minimum(xy[:, 0], xy[:, 2])
    x2 = jnp.maximum(xy[:, 0], xy[:, 2]) + 1.0
    y1 = jnp.minimum(xy[:, 1], xy[:, 3])
    y2 = jnp.maximum(xy[:, 1], xy[:, 3]) + 1.0
    batch_idx = jnp.array([0, 0, 0, 0, 1, 1, 1, 1], jnp.float32)
    rois = jnp.stack([batch_idx, x1, y1, x2, y2], axis=1)

    # class prototypes (the `k` loaded from pickle at test time in the reference)
    prototypes = jax.random.normal(k_proto, (K_PROTO, HIDDEN), jnp.float32)

    head = ROIBoxHeadPallas(k_param, in_channels=C, pool_size=POOL,
                            hidden=HIDDEN, num_classes=NUM_CLASSES)
    x_out, cls_logits, box_reg = head(features, rois, prototypes)
    jax.block_until_ready((x_out, cls_logits, box_reg))

    assert x_out.shape == (N_ROI, 2 * HIDDEN)
    assert cls_logits.shape == (N_ROI, NUM_CLASSES)
    assert box_reg.shape == (N_ROI, 4 * NUM_CLASSES)
    assert bool(jnp.all(jnp.isfinite(x_out)))
    assert bool(jnp.all(jnp.isfinite(cls_logits)))
    assert bool(jnp.all(jnp.isfinite(box_reg)))
    print("KERNEL_OK")
</pallas_src>

<mosaic_0001>
module attributes {stable_mosaic.version = 11 : i64} {
  func.func @_fused_box_head_kernel(%arg0: i32, %arg1: memref<8x128xf32, #tpu.memory_space<vmem>>, %arg2: memref<16x128xf32, #tpu.memory_space<vmem>>, %arg3: memref<128x128xbf16, #tpu.memory_space<vmem>>, %arg4: memref<1x128xf32, #tpu.memory_space<vmem>>, %arg5: memref<128x128xbf16, #tpu.memory_space<vmem>>, %arg6: memref<1x128xf32, #tpu.memory_space<vmem>>, %arg7: memref<128x128xbf16, #tpu.memory_space<vmem>>, %arg8: memref<1x128xf32, #tpu.memory_space<vmem>>, %arg9: memref<128x128xbf16, #tpu.memory_space<vmem>>, %arg10: memref<1x128xf32, #tpu.memory_space<vmem>>, %arg11: memref<128x128xbf16, #tpu.memory_space<vmem>>, %arg12: memref<1x128xf32, #tpu.memory_space<vmem>>, %arg13: memref<128x128xbf16, #tpu.memory_space<vmem>>, %arg14: memref<128x128xbf16, #tpu.memory_space<vmem>>, %arg15: memref<1x128xf32, #tpu.memory_space<vmem>>, %arg16: memref<8x256xf32, #tpu.memory_space<vmem>>, %arg17: memref<8x128xf32, #tpu.memory_space<vmem>>) attributes {dimension_semantics = [#tpu.dimension_semantics<parallel>], iteration_bounds = array<i64: 1>, scalar_prefetch = 0 : i64, scratch_operands = 0 : i64, tpu.core_type = #tpu.core_type<tc>, window_params = [{transform_indices = @transform_0, window_bounds = array<i64: 8, 128>}, {pipeline_mode = #tpu.pipeline_mode<synchronous>, transform_indices = @transform_1, window_bounds = array<i64: 16, 128>}, {pipeline_mode = #tpu.pipeline_mode<synchronous>, transform_indices = @transform_2, window_bounds = array<i64: 128, 128>}, {pipeline_mode = #tpu.pipeline_mode<synchronous>, transform_indices = @transform_3, window_bounds = array<i64: 1, 128>}, {pipeline_mode = #tpu.pipeline_mode<synchronous>, transform_indices = @transform_4, window_bounds = array<i64: 128, 128>}, {pipeline_mode = #tpu.pipeline_mode<synchronous>, transform_indices = @transform_5, window_bounds = array<i64: 1, 128>}, {pipeline_mode = #tpu.pipeline_mode<synchronous>, transform_indices = @transform_6, window_bounds = array<i64: 128, 128>}, {pipeline_mode = #tpu.pipeline_mode<synchronous>, transform_indices = @transform_7, window_bounds = array<i64: 1, 128>}, {pipeline_mode = #tpu.pipeline_mode<synchronous>, transform_indices = @transform_8, window_bounds = array<i64: 128, 128>}, {pipeline_mode = #tpu.pipeline_mode<synchronous>, transform_indices = @transform_9, window_bounds = array<i64: 1, 128>}, {pipeline_mode = #tpu.pipeline_mode<synchronous>, transform_indices = @transform_10, window_bounds = array<i64: 128, 128>}, {pipeline_mode = #tpu.pipeline_mode<synchronous>, transform_indices = @transform_11, window_bounds = array<i64: 1, 128>}, {pipeline_mode = #tpu.pipeline_mode<synchronous>, transform_indices = @transform_12, window_bounds = array<i64: 128, 128>}, {pipeline_mode = #tpu.pipeline_mode<synchronous>, transform_indices = @transform_13, window_bounds = array<i64: 128, 128>}, {pipeline_mode = #tpu.pipeline_mode<synchronous>, transform_indices = @transform_14, window_bounds = array<i64: 1, 128>}, {transform_indices = @transform_15, window_bounds = array<i64: 8, 256>}, {transform_indices = @transform_16, window_bounds = array<i64: 8, 128>}]} {
    %c0 = arith.constant 0 : index
    %c0_0 = arith.constant 0 : index
    %0 = vector.load %arg1[%c0, %c0_0] : memref<8x128xf32, #tpu.memory_space<vmem>>, vector<8x128xf32>
    %1 = arith.truncf %0 : vector<8x128xf32> to vector<8x128xbf16>
    %c0_1 = arith.constant 0 : index
    %c0_2 = arith.constant 0 : index
    %2 = vector.load %arg3[%c0_1, %c0_2] : memref<128x128xbf16, #tpu.memory_space<vmem>>, vector<128x128xbf16>
    %cst = arith.constant dense<0.000000e+00> : vector<8x128xf32>
    %3 = tpu.matmul %1, %2, %cst {dimension_numbers = #tpu.dot_dimension_numbers<[1], [0], [0], [1], [0, 0, 1, 1], [], []>} : vector<8x128xbf16>, vector<128x128xbf16>, vector<8x128xf32> -> vector<8x128xf32>
    %c0_3 = arith.constant 0 : index
    %c0_4 = arith.constant 0 : index
    %4 = vector.load %arg4[%c0_3, %c0_4] : memref<1x128xf32, #tpu.memory_space<vmem>>, vector<1x128xf32>
    %5 = vector.broadcast %4 : vector<1x128xf32> to vector<8x128xf32>
    %6 = arith.addf %3, %5 : vector<8x128xf32>
    %cst_5 = arith.constant 0.000000e+00 : f32
    %7 = vector.broadcast %cst_5 : f32 to vector<8x128xf32>
    %8 = arith.maximumf %6, %7 : vector<8x128xf32>
    %9 = arith.truncf %8 : vector<8x128xf32> to vector<8x128xbf16>
    %c0_6 = arith.constant 0 : index
    %c0_7 = arith.constant 0 : index
    %10 = vector.load %arg5[%c0_6, %c0_7] : memref<128x128xbf16, #tpu.memory_space<vmem>>, vector<128x128xbf16>
    %cst_8 = arith.constant dense<0.000000e+00> : vector<8x128xf32>
    %11 = tpu.matmul %9, %10, %cst_8 {dimension_numbers = #tpu.dot_dimension_numbers<[1], [0], [0], [1], [0, 0, 1, 1], [], []>} : vector<8x128xbf16>, vector<128x128xbf16>, vector<8x128xf32> -> vector<8x128xf32>
    %c0_9 = arith.constant 0 : index
    %c0_10 = arith.constant 0 : index
    %12 = vector.load %arg6[%c0_9, %c0_10] : memref<1x128xf32, #tpu.memory_space<vmem>>, vector<1x128xf32>
    %13 = vector.broadcast %12 : vector<1x128xf32> to vector<8x128xf32>
    %14 = arith.addf %11, %13 : vector<8x128xf32>
    %cst_11 = arith.constant 0.000000e+00 : f32
    %15 = vector.broadcast %cst_11 : f32 to vector<8x128xf32>
    %16 = arith.maximumf %14, %15 : vector<8x128xf32>
    %17 = arith.truncf %16 : vector<8x128xf32> to vector<8x128xbf16>
    %c0_12 = arith.constant 0 : index
    %c0_13 = arith.constant 0 : index
    %18 = vector.load %arg2[%c0_12, %c0_13] : memref<16x128xf32, #tpu.memory_space<vmem>>, vector<16x128xf32>
    %19 = arith.truncf %18 : vector<16x128xf32> to vector<16x128xbf16>
    %c0_14 = arith.constant 0 : index
    %c0_15 = arith.constant 0 : index
    %20 = vector.load %arg7[%c0_14, %c0_15] : memref<128x128xbf16, #tpu.memory_space<vmem>>, vector<128x128xbf16>
    %cst_16 = arith.constant dense<0.000000e+00> : vector<8x128xf32>
    %21 = tpu.matmul %17, %20, %cst_16 {dimension_numbers = #tpu.dot_dimension_numbers<[1], [0], [0], [1], [0, 0, 1, 1], [], []>} : vector<8x128xbf16>, vector<128x128xbf16>, vector<8x128xf32> -> vector<8x128xf32>
    %c0_17 = arith.constant 0 : index
    %c0_18 = arith.constant 0 : index
    %22 = vector.load %arg8[%c0_17, %c0_18] : memref<1x128xf32, #tpu.memory_space<vmem>>, vector<1x128xf32>
    %23 = vector.broadcast %22 : vector<1x128xf32> to vector<8x128xf32>
    %24 = arith.addf %21, %23 : vector<8x128xf32>
    %c0_19 = arith.constant 0 : index
    %c0_20 = arith.constant 0 : index
    %25 = vector.load %arg9[%c0_19, %c0_20] : memref<128x128xbf16, #tpu.memory_space<vmem>>, vector<128x128xbf16>
    %cst_21 = arith.constant dense<0.000000e+00> : vector<16x128xf32>
    %26 = tpu.matmul %19, %25, %cst_21 {dimension_numbers = #tpu.dot_dimension_numbers<[1], [0], [0], [1], [0, 0, 1, 1], [], []>} : vector<16x128xbf16>, vector<128x128xbf16>, vector<16x128xf32> -> vector<16x128xf32>
    %c0_22 = arith.constant 0 : index
    %c0_23 = arith.constant 0 : index
    %27 = vector.load %arg10[%c0_22, %c0_23] : memref<1x128xf32, #tpu.memory_space<vmem>>, vector<1x128xf32>
    %28 = vector.broadcast %27 : vector<1x128xf32> to vector<16x128xf32>
    %29 = arith.addf %26, %28 : vector<16x128xf32>
    %c0_24 = arith.constant 0 : index
    %c0_25 = arith.constant 0 : index
    %30 = vector.load %arg11[%c0_24, %c0_25] : memref<128x128xbf16, #tpu.memory_space<vmem>>, vector<128x128xbf16>
    %cst_26 = arith.constant dense<0.000000e+00> : vector<16x128xf32>
    %31 = tpu.matmul %19, %30, %cst_26 {dimension_numbers = #tpu.dot_dimension_numbers<[1], [0], [0], [1], [0, 0, 1, 1], [], []>} : vector<16x128xbf16>, vector<128x128xbf16>, vector<16x128xf32> -> vector<16x128xf32>
    %c0_27 = arith.constant 0 : index
    %c0_28 = arith.constant 0 : index
    %32 = vector.load %arg12[%c0_27, %c0_28] : memref<1x128xf32, #tpu.memory_space<vmem>>, vector<1x128xf32>
    %33 = vector.broadcast %32 : vector<1x128xf32> to vector<16x128xf32>
    %34 = arith.addf %31, %33 : vector<16x128xf32>
    %35 = arith.truncf %24 : vector<8x128xf32> to vector<8x128xbf16>
    %36 = arith.truncf %29 : vector<16x128xf32> to vector<16x128xbf16>
    %cst_29 = arith.constant dense<0.000000e+00> : vector<8x16xf32>
    %37 = tpu.matmul %35, %36, %cst_29 {dimension_numbers = #tpu.dot_dimension_numbers<[1], [1], [0], [0], [0, 0, 1, 0], [], []>} : vector<8x128xbf16>, vector<16x128xbf16>, vector<8x16xf32> -> vector<8x16xf32>
    %cst_30 = arith.constant dense<0xFF800000> : vector<8xf32>
    %38 = vector.multi_reduction <maximumf>, %37, %cst_30 [1] : vector<8x16xf32> to vector<8xf32>
    %39 = vector.shape_cast %38 : vector<8xf32> to vector<8x1xf32>
    %40 = vector.broadcast %39 : vector<8x1xf32> to vector<8x16xf32>
    %41 = arith.subf %37, %40 : vector<8x16xf32>
    %42 = math.exp %41 : vector<8x16xf32>
    %cst_31 = arith.constant dense<0.000000e+00> : vector<8xf32>
    %43 = vector.multi_reduction <add>, %42, %cst_31 [1] : vector<8x16xf32> to vector<8xf32>
    %44 = vector.shape_cast %43 : vector<8xf32> to vector<8x1xf32>
    %45 = tpu.reciprocal %44 {approx = true} : vector<8x1xf32> -> vector<8x1xf32>
    %46 = vector.broadcast %45 : vector<8x1xf32> to vector<8x16xf32>
    %47 = arith.mulf %42, %46 : vector<8x16xf32>
    %48 = arith.truncf %47 : vector<8x16xf32> to vector<8x16xbf16>
    %49 = arith.truncf %34 : vector<16x128xf32> to vector<16x128xbf16>
    %cst_32 = arith.constant dense<0.000000e+00> : vector<8x128xf32>
    %50 = tpu.matmul %48, %49, %cst_32 {dimension_numbers = #tpu.dot_dimension_numbers<[1], [0], [0], [1], [0, 0, 1, 1], [], []>} : vector<8x16xbf16>, vector<16x128xbf16>, vector<8x128xf32> -> vector<8x128xf32>
    %51 = arith.truncf %50 : vector<8x128xf32> to vector<8x128xbf16>
    %c0_33 = arith.constant 0 : index
    %c0_34 = arith.constant 0 : index
    %52 = vector.load %arg16[%c0_33, %c0_34] : memref<8x256xf32, #tpu.memory_space<vmem>>, vector<8x128xf32>
    tpu.vector_store %arg16[%c0_33, %c0_34], %16 {strides = array<i32>} : memref<8x256xf32, #tpu.memory_space<vmem>>, vector<8x128xf32>,
    %c0_35 = arith.constant 0 : index
    %c128 = arith.constant 128 : index
    %53 = vector.load %arg16[%c0_35, %c128] : memref<8x256xf32, #tpu.memory_space<vmem>>, vector<8x128xf32>
    tpu.vector_store %arg16[%c0_35, %c128], %50 {strides = array<i32>} : memref<8x256xf32, #tpu.memory_space<vmem>>, vector<8x128xf32>,
    %c0_36 = arith.constant 0 : index
    %c0_37 = arith.constant 0 : index
    %54 = vector.load %arg13[%c0_36, %c0_37] : memref<128x128xbf16, #tpu.memory_space<vmem>>, vector<128x128xbf16>
    %cst_38 = arith.constant dense<0.000000e+00> : vector<8x128xf32>
    %55 = tpu.matmul %17, %54, %cst_38 {dimension_numbers = #tpu.dot_dimension_numbers<[1], [0], [0], [1], [0, 0, 1, 1], [], []>} : vector<8x128xbf16>, vector<128x128xbf16>, vector<8x128xf32> -> vector<8x128xf32>
    %c0_39 = arith.constant 0 : index
    %c0_40 = arith.constant 0 : index
    %56 = vector.load %arg14[%c0_39, %c0_40] : memref<128x128xbf16, #tpu.memory_space<vmem>>, vector<128x128xbf16>
    %cst_41 = arith.constant dense<0.000000e+00> : vector<8x128xf32>
    %57 = tpu.matmul %51, %56, %cst_41 {dimension_numbers = #tpu.dot_dimension_numbers<[1], [0], [0], [1], [0, 0, 1, 1], [], []>} : vector<8x128xbf16>, vector<128x128xbf16>, vector<8x128xf32> -> vector<8x128xf32>
    %58 = arith.addf %55, %57 : vector<8x128xf32>
    %c0_42 = arith.constant 0 : index
    %c0_43 = arith.constant 0 : index
    %59 = vector.load %arg15[%c0_42, %c0_43] : memref<1x128xf32, #tpu.memory_space<vmem>>, vector<1x128xf32>
    %60 = vector.broadcast %59 : vector<1x128xf32> to vector<8x128xf32>
    %61 = arith.addf %58, %60 : vector<8x128xf32>
    %c0_44 = arith.constant 0 : index
    %c0_45 = arith.constant 0 : index
    %62 = vector.load %arg17[%c0_44, %c0_45] : memref<8x128xf32, #tpu.memory_space<vmem>>, vector<8x128xf32>
    tpu.vector_store %arg17[%c0_44, %c0_45], %61 {strides = array<i32>} : memref<8x128xf32, #tpu.memory_space<vmem>>, vector<8x128xf32>,
    return
  }
  func.func @transform_0(%arg0: i32) -> (i32, i32) {
    %c0_i32 = arith.constant 0 : i32
    %c0_i32_0 = arith.constant 0 : i32
    return %arg0, %c0_i32 : i32, i32
  }
  func.func @transform_1(%arg0: i32) -> (i32, i32) {
    %c0_i32 = arith.constant 0 : i32
    %c0_i32_0 = arith.constant 0 : i32
    %c0_i32_1 = arith.constant 0 : i32
    return %c0_i32, %c0_i32_0 : i32, i32
  }
  func.func @transform_2(%arg0: i32) -> (i32, i32) {
    %c0_i32 = arith.constant 0 : i32
    %c0_i32_0 = arith.constant 0 : i32
    %c0_i32_1 = arith.constant 0 : i32
    return %c0_i32, %c0_i32_0 : i32, i32
  }
  func.func @transform_3(%arg0: i32) -> (i32, i32) {
    %c0_i32 = arith.constant 0 : i32
    %c0_i32_0 = arith.constant 0 : i32
    %c0_i32_1 = arith.constant 0 : i32
    return %c0_i32, %c0_i32_0 : i32, i32
  }
  func.func @transform_4(%arg0: i32) -> (i32, i32) {
    %c0_i32 = arith.constant 0 : i32
    %c0_i32_0 = arith.constant 0 : i32
    %c0_i32_1 = arith.constant 0 : i32
    return %c0_i32, %c0_i32_0 : i32, i32
  }
  func.func @transform_5(%arg0: i32) -> (i32, i32) {
    %c0_i32 = arith.constant 0 : i32
    %c0_i32_0 = arith.constant 0 : i32
    %c0_i32_1 = arith.constant 0 : i32
    return %c0_i32, %c0_i32_0 : i32, i32
  }
  func.func @transform_6(%arg0: i32) -> (i32, i32) {
    %c0_i32 = arith.constant 0 : i32
    %c0_i32_0 = arith.constant 0 : i32
    %c0_i32_1 = arith.constant 0 : i32
    return %c0_i32, %c0_i32_0 : i32, i32
  }
  func.func @transform_7(%arg0: i32) -> (i32, i32) {
    %c0_i32 = arith.constant 0 : i32
    %c0_i32_0 = arith.constant 0 : i32
    %c0_i32_1 = arith.constant 0 : i32
    return %c0_i32, %c0_i32_0 : i32, i32
  }
  func.func @transform_8(%arg0: i32) -> (i32, i32) {
    %c0_i32 = arith.constant 0 : i32
    %c0_i32_0 = arith.constant 0 : i32
    %c0_i32_1 = arith.constant 0 : i32
    return %c0_i32, %c0_i32_0 : i32, i32
  }
  func.func @transform_9(%arg0: i32) -> (i32, i32) {
    %c0_i32 = arith.constant 0 : i32
    %c0_i32_0 = arith.constant 0 : i32
    %c0_i32_1 = arith.constant 0 : i32
    return %c0_i32, %c0_i32_0 : i32, i32
  }
  func.func @transform_10(%arg0: i32) -> (i32, i32) {
    %c0_i32 = arith.constant 0 : i32
    %c0_i32_0 = arith.constant 0 : i32
    %c0_i32_1 = arith.constant 0 : i32
    return %c0_i32, %c0_i32_0 : i32, i32
  }
  func.func @transform_11(%arg0: i32) -> (i32, i32) {
    %c0_i32 = arith.constant 0 : i32
    %c0_i32_0 = arith.constant 0 : i32
    %c0_i32_1 = arith.constant 0 : i32
    return %c0_i32, %c0_i32_0 : i32, i32
  }
  func.func @transform_12(%arg0: i32) -> (i32, i32) {
    %c0_i32 = arith.constant 0 : i32
    %c0_i32_0 = arith.constant 0 : i32
    %c0_i32_1 = arith.constant 0 : i32
    return %c0_i32, %c0_i32_0 : i32, i32
  }
  func.func @transform_13(%arg0: i32) -> (i32, i32) {
    %c0_i32 = arith.constant 0 : i32
    %c0_i32_0 = arith.constant 0 : i32
    %c0_i32_1 = arith.constant 0 : i32
    return %c0_i32, %c0_i32_0 : i32, i32
  }
  func.func @transform_14(%arg0: i32) -> (i32, i32) {
    %c0_i32 = arith.constant 0 : i32
    %c0_i32_0 = arith.constant 0 : i32
    %c0_i32_1 = arith.constant 0 : i32
    return %c0_i32, %c0_i32_0 : i32, i32
  }
  func.func @transform_15(%arg0: i32) -> (i32, i32) {
    %c0_i32 = arith.constant 0 : i32
    %c0_i32_0 = arith.constant 0 : i32
    return %arg0, %c0_i32 : i32, i32
  }
  func.func @transform_16(%arg0: i32) -> (i32, i32) {
    %c0_i32 = arith.constant 0 : i32
    %c0_i32_0 = arith.constant 0 : i32
    return %arg0, %c0_i32 : i32, i32
  }
}

</mosaic_0001>

<bundles_post_ra>
// kernel: a_call__.1
= control target key start
LH: loop header
LB: loop body
LE: loop exit
PB: predicated region body
PF: predicated region fallthrough
CT: control target
= control target key end

     0   :  { %s1309_s0 = inlined_call_operand.vmem [shape: f32[8,128], index: 0, kind: input, shape index: {}]   ;;  %s1310_s1 = inlined_call_operand.vmem [shape: f32[16,128], index: 1, kind: input, shape index: {}]   ;;  %s1311_s2 = inlined_call_operand.vmem [shape: bf16[128,128], index: 2, kind: input, shape index: {}]   ;;  %s1312_s3 = inlined_call_operand.vmem [shape: f32[1,128], index: 3, kind: input, shape index: {}, may-alias: {3,5,7,9,11,14}]   ;;  %s1313_s4 = inlined_call_operand.vmem [shape: bf16[128,128], index: 4, kind: input, shape index: {}]   ;;  %s1314_s5 = inlined_call_operand.vmem [shape: f32[1,128], index: 5, kind: input, shape index: {}, may-alias: {3,5,7,9,11,14}]   ;;  %s1315_s6 = inlined_call_operand.vmem [shape: bf16[128,128], index: 6, kind: input, shape index: {}]   ;;  %s1316_s7 = inlined_call_operand.vmem [shape: f32[1,128], index: 7, kind: input, shape index: {}, may-alias: {3,5,7,9,11,14}]   ;;  %s1317_s8 = inlined_call_operand.vmem [shape: bf16[128,128], index: 8, kind: input, shape index: {}]   ;;  %s1318_s9 = inlined_call_operand.vmem [shape: f32[1,128], index: 9, kind: input, shape index: {}, may-alias: {3,5,7,9,11,14}]   ;;  %s1319_s10 = inlined_call_operand.vmem [shape: bf16[128,128], index: 10, kind: input, shape index: {}]   ;;  %s1320_s11 = inlined_call_operand.vmem [shape: f32[1,128], index: 11, kind: input, shape index: {}, may-alias: {3,5,7,9,11,14}]   ;;  %s1321_s12 = inlined_call_operand.vmem [shape: bf16[128,128], index: 12, kind: input, shape index: {}]   ;;  %s1322_s13 = inlined_call_operand.vmem [shape: bf16[128,128], index: 13, kind: input, shape index: {}]   ;;  %s1323_s14 = inlined_call_operand.vmem [shape: f32[1,128], index: 14, kind: input, shape index: {}, may-alias: {3,5,7,9,11,14}]   ;;  %s1324_s15 = inlined_call_operand.hbm [shape: f32[8,256], index: 15, kind: output, shape index: {0}]   ;;  %s1325_s16 = inlined_call_operand.vmem [shape: f32[8,128], index: 16, kind: output, shape index: {1}]  }
   0x1   :  { %1326 = sst [smem:[#allocation5_spill]] %s1309_s0 }
   0x2   :  { %v930_v0 = vld [vmem:[%s1311_s2 + $0x38] sm:$0xff]  ;;  %v929_v1 = vld [vmem:[%s1311_s2 + $0x30] sm:$0xff]  ;;  %v928_v3 = vld [vmem:[%s1311_s2 + $0x28] sm:$0xff] }
   0x3   :  { %124 = vmatpush.bf16.msra.mxu0 %v930_v0  ;;  %v938_v2 = vld [vmem:[%s1313_s4 + $0x38] sm:$0xff]  ;;  %v937_v4 = vld [vmem:[%s1313_s4 + $0x30] sm:$0xff] }
   0x4   :  { %207 = vmatpush.bf16.msra.mxu1 %v938_v2 }
   0x7   :  { %125 = vmatpush.bf16.msra.mxu0 %v929_v1 }
   0x8   :  { %22 = vsyncpa [#allocation3], 0  ;;  %208 = vmatpush.bf16.msra.mxu1 %v937_v4  ;;  %v936_v5 = vld [vmem:[%s1313_s4 + $0x28] sm:$0xff]  ;;  %v927_v6 = vld [vmem:[%s1311_s2 + $0x20] sm:$0xff]  ;;  %s1327_s21 = sld [smem:[#allocation5_spill]]  ;;  %vm485_vm0 = vcmask 130048  }
   0x9   :  { %v935_v7 = vld [vmem:[%s1313_s4 + $0x20] sm:$0xff]  ;;  %v926_v8 = vld [vmem:[%s1311_s2 + $0x18] sm:$0xff]  ;;  %v925_v10 = vld [vmem:[%s1311_s2 + $0x10] sm:$0xff]  ;;  %s1016_s17 = smov [#allocation2]   ;;  %s685_s20 = sshll.u32 %s1324_s15, 4  ;;  %s686_s20 = int_to_ptr.hbm [resolvable:$true] %s685_s20 }
   0xa   :  { %v934_v9 = vld [vmem:[%s1313_s4 + $0x18] sm:$0xff]  ;;  %v933_v11 = vld [vmem:[%s1313_s4 + $0x10] sm:$0xff]  ;;  %v924_v12 = vld [vmem:[%s1311_s2 + $0x8] sm:$0xff] }
   0xb   :  { %126 = vmatpush.bf16.msra.mxu0 %v928_v3  ;;  %v923_v13 = vld [vmem:[%s1311_s2] sm:$0xff]  ;;  %v932_v16 = vld [vmem:[%s1313_s4 + $0x8] sm:$0xff]  ;;  %v954_v18 = vld [vmem:[%s1317_s8 + $0x38] sm:$0xff] }
   0xc   :  { %209 = vmatpush.bf16.msra.mxu1 %v936_v5  ;;  %v931_v17 = vld [vmem:[%s1313_s4] sm:$0xff]  ;;  %374 = vmatpush.bf16.msra.mxu3 %v954_v18  ;;  %v953_v19 = vld [vmem:[%s1317_s8 + $0x30] sm:$0xff]  ;;  %v946_v20 = vld [vmem:[%s1315_s6 + $0x38] sm:$0xff]  ;;  %s683_s4 = sshll.u32 %s1016_s17, 4  ;;  %s684_s4 = int_to_ptr.vmem [resolvable:$true] %s683_s4 }
   0xd   :  { %v970_v21 = vld [vmem:[%s1321_s12 + $0x38] sm:$0xff]  ;;  %293 = vmatpush.bf16.msra.mxu2 %v946_v20  ;;  %v945_v22 = vld [vmem:[%s1315_s6 + $0x30] sm:$0xff]  ;;  %v952_v24 = vld [vmem:[%s1317_s8 + $0x28] sm:$0xff] }
   0xe   :  { %v54_v14 = vld [vmem:[%s1327_s21] sm:$0xff]  ;;  %v969_v23 = vld [vmem:[%s1321_s12 + $0x30] sm:$0xff]  ;;  %v944_v25 = vld [vmem:[%s1315_s6 + $0x28] sm:$0xff] }
   0xf   :  { %127 = vmatpush.bf16.msra.mxu0 %v927_v6  ;;  %v55_v15 = vpack.c.bf16 %v54_v14, %v54_v14  ;;  %v968_v26 = vld [vmem:[%s1321_s12 + $0x28] sm:$0xff]  ;;  %v951_v27 = vld [vmem:[%s1317_s8 + $0x20] sm:$0xff]  ;;  %v950_v30 = vld [vmem:[%s1317_s8 + $0x18] sm:$0xff] }
  0x10   :  { %210 = vmatpush.bf16.msra.mxu1 %v935_v7  ;;  %375 = vmatpush.bf16.msra.mxu3 %v953_v19  ;;  %v943_v28 = vld [vmem:[%s1315_s6 + $0x20] sm:$0xff]  ;;  %v942_v31 = vld [vmem:[%s1315_s6 + $0x18] sm:$0xff]  ;;  %v949_v33 = vld [vmem:[%s1317_s8 + $0x10] sm:$0xff] }
  0x11   :  { %294 = vmatpush.bf16.msra.mxu2 %v945_v22  ;;  %v967_v29 = vld [vmem:[%s1321_s12 + $0x20] sm:$0xff]  ;;  %v966_v32 = vld [vmem:[%s1321_s12 + $0x18] sm:$0xff]  ;;  %v941_v35 = vld [vmem:[%s1315_s6 + $0x10] sm:$0xff] }
  0x12   :  { %v980_v34 = vld [vmem:[%s1312_s3] ss:$0 sm:$0xff]  ;;  %v965_v36 = vld [vmem:[%s1321_s12 + $0x10] sm:$0xff]  ;;  %v948_v37 = vld [vmem:[%s1317_s8 + $0x8] sm:$0xff] }
  0x13   :  { %128 = vmatpush.bf16.msra.mxu0 %v926_v8  ;;  %v947_v40 = vld [vmem:[%s1317_s8] sm:$0xff]  ;;  %v223_v42 = vld [vmem:[%s1310_s1 + $0x8] sm:$0xff]  ;;  %v962_v6 = vld [vmem:[%s1319_s10 + $0x38] sm:$0xff] }
  0x14   :  { %211 = vmatpush.bf16.msra.mxu1 %v934_v9  ;;  %376 = vmatpush.bf16.msra.mxu3 %v952_v24  ;;  %v222_v41 = vld [vmem:[%s1310_s1] sm:$0xff]  ;;  %v940_v47 = vld [vmem:[%s1315_s6 + $0x8] sm:$0xff]  ;;  %v961_v7 = vld [vmem:[%s1319_s10 + $0x30] sm:$0xff] }
  0x15   :  { %295 = vmatpush.bf16.msra.mxu2 %v944_v25  ;;  %v224_v45 = vpack.c.bf16 %v223_v42, %v222_v41  ;;  %v964_v48 = vld [vmem:[%s1321_s12 + $0x8] sm:$0xff]  ;;  %v939_v49 = vld [vmem:[%s1315_s6] sm:$0xff] }
  0x16   :  { %v963_v50 = vld [vmem:[%s1321_s12] sm:$0xff]  ;;  %v960_v8 = vld [vmem:[%s1319_s10 + $0x28] sm:$0xff] }
  0x17   :  { %129 = vmatpush.bf16.msra.mxu0 %v925_v10  ;;  %v981_v51 = vld [vmem:[%s1314_s5] ss:$0 sm:$0xff]  ;;  %v958_v10 = vld [vmem:[%s1319_s10 + $0x18] sm:$0xff] }
  0x18   :  { %212 = vmatpush.bf16.msra.mxu1 %v933_v11  ;;  %377 = vmatpush.bf16.msra.mxu3 %v951_v27  ;;  %v982_v58 = vld [vmem:[%s1318_s9] ss:$0 sm:$0xff]  ;;  %v957_v11 = vld [vmem:[%s1319_s10 + $0x10] sm:$0xff] }
  0x19   :  { %296 = vmatpush.bf16.msra.mxu2 %v943_v28  ;;  %v983_v0 = vld [vmem:[%s1316_s7] ss:$0 sm:$0xff]  ;;  %v978_v28 = vld [vmem:[%s1322_s13 + $0x38] sm:$0xff] }
  0x1a   :  { %v959_v9 = vld [vmem:[%s1319_s10 + $0x20] sm:$0xff] }
  0x1b   :  { %130 = vmatpush.bf16.msra.mxu0 %v924_v12  ;;  %v956_v12 = vld [vmem:[%s1319_s10 + $0x8] sm:$0xff] }
  0x1c   :  { %213 = vmatpush.bf16.msra.mxu1 %v932_v16  ;;  %378 = vmatpush.bf16.msra.mxu3 %v950_v30  ;;  %v976_v30 = vld [vmem:[%s1322_s13 + $0x28] sm:$0xff] }
  0x1d   :  { %297 = vmatpush.bf16.msra.mxu2 %v942_v31  ;;  %v975_v31 = vld [vmem:[%s1322_s13 + $0x20] sm:$0xff] }
  0x1f   :  { %131 = vmatpush.bf16.msra.mxu0 %v923_v13 }
  0x20   :  { %214 = vmatpush.bf16.msra.mxu1 %v931_v17  ;;  %379 = vmatpush.bf16.msra.mxu3 %v949_v33  ;;  %v973_v33 = vld [vmem:[%s1322_s13 + $0x10] sm:$0xff] }
  0x21   :  { %298 = vmatpush.bf16.msra.mxu2 %v941_v35  ;;  %v972_v35 = vld [vmem:[%s1322_s13 + $0x8] sm:$0xff] }
  0x22   :  { %132 = vmatmul.bf16.vlgmr.msra.gmra.mxu0 %v55_v15  ;;  %v955_v15 = vld [vmem:[%s1319_s10] sm:$0xff] }
  0x23   :  { %456 = vmatpush.bf16.msrb.mxu0 %v962_v6 }
  0x24   :  { %659 = vmatpush.bf16.msrb.mxu1 %v970_v21  ;;  %380 = vmatpush.bf16.msra.mxu3 %v948_v37 }
  0x25   :  { %299 = vmatpush.bf16.msra.mxu2 %v940_v47 }
  0x27   :  { %457 = vmatpush.bf16.msrb.mxu0 %v961_v7 }
  0x28   :  { %660 = vmatpush.bf16.msrb.mxu1 %v969_v23  ;;  %381 = vmatpush.bf16.msra.mxu3 %v947_v40  ;;  %v984_v23 = vld [vmem:[%s1320_s11] ss:$0 sm:$0xff] }
  0x29   :  { %300 = vmatpush.bf16.msra.mxu2 %v939_v49 }
  0x2b   :  { %382 = vmatmul.bf16.vlgmr.msra.gmra.mxu3 %v224_v45  ;;  %458 = vmatpush.bf16.msrb.mxu0 %v960_v8 }
  0x2c   :  { %661 = vmatpush.bf16.msrb.mxu1 %v968_v26  ;;  %598 = vmatpush.bf16.msrb.mxu3 %v978_v28 }
  0x2f   :  { %459 = vmatpush.bf16.msrb.mxu0 %v959_v9 }
  0x30   :  { %662 = vmatpush.bf16.msrb.mxu1 %v967_v29  ;;  %v977_v29 = vld [vmem:[%s1322_s13 + $0x30] sm:$0xff] }
  0x31   :  { %599 = vmatpush.bf16.msrb.mxu3 %v977_v29 }
  0x33   :  { %460 = vmatpush.bf16.msrb.mxu0 %v958_v10 }
  0x34   :  { %663 = vmatpush.bf16.msrb.mxu1 %v966_v32  ;;  %v974_v32 = vld [vmem:[%s1322_s13 + $0x18] sm:$0xff] }
  0x35   :  { %600 = vmatpush.bf16.msrb.mxu3 %v976_v30 }
  0x37   :  { %461 = vmatpush.bf16.msrb.mxu0 %v957_v11 }
  0x38   :  { %664 = vmatpush.bf16.msrb.mxu1 %v965_v36 }
  0x39   :  { %601 = vmatpush.bf16.msrb.mxu3 %v975_v31 }
  0x3b   :  { %462 = vmatpush.bf16.msrb.mxu0 %v956_v12 }
  0x3c   :  { %665 = vmatpush.bf16.msrb.mxu1 %v964_v48 }
  0x3d   :  { %602 = vmatpush.bf16.msrb.mxu3 %v974_v32 }
  0x3f   :  { %463 = vmatpush.bf16.msrb.mxu0 %v955_v15 }
  0x40   :  { %666 = vmatpush.bf16.msrb.mxu1 %v963_v50 }
  0x41   :  { %603 = vmatpush.bf16.msrb.mxu3 %v973_v33 }
  0x42   :  { %464 = vmatmul.bf16.vlgmr.msrb.gmra.mxu0 %v224_v45 }
  0x45   :  { %604 = vmatpush.bf16.msrb.mxu3 %v972_v35 }
  0x9f   :  { %v133_v38 = vpop.f32.mrf.mxu0 }
  0xa0   :  { %v134_v39 = vadd.f32 %v980_v34, %v133_v38 }
  0xa2   :  { %v137_v43 = vmax.f32 %v134_v39, 0.0  ;;  %v971_v39 = vld [vmem:[%s1322_s13] sm:$0xff] }
  0xa3   :  { %605 = vmatpush.bf16.msrb.mxu3 %v971_v39 }
  0xa4   :  { %v138_v44 = vpack.c.bf16 %v137_v43, %v137_v43  ;;  %v985_v43 = vld [vmem:[%s1323_s14] ss:$0 sm:$0xff] }
  0xa6   :  { %215 = vmatmul.bf16.vlgmr.msra.gmra.mxu1 %v138_v44 }
  0xa7   :  { %v135_v46 = vpop.f32.mrf.mxu0 }
  0xae   :  { %v383_v57 = vpop.f32.mrf.mxu3 }
  0xaf   :  { %v384_v59 = vadd.f32 %v982_v58, %v383_v57 }
  0xb6   :  { %v385_v60 = vpop.f32.mrf.mxu3 }
  0xb7   :  { %v386_v61 = vadd.f32 %v982_v58, %v385_v60 }
  0xb9   :  { %v471_v62 = vpack.c.bf16 %v386_v61, %v384_v59 }
  0xbb   :  { %479 = vmatpush.bf16.xpose.msrb.mxu2 %v471_v62 }
  0xbf   :  { %v465_v22 = vpop.f32.mrf.mxu0 }
  0xc0   :  { %v466_v24 = vadd.f32 %v984_v23, %v465_v22 }
  0xc7   :  { %v467_v25 = vpop.f32.mrf.mxu0 }
  0xc8   :  { %v468_v26 = vadd.f32 %v984_v23, %v467_v25 }
  0xca   :  { %v498_v27 = vpack.c.bf16 %v468_v26, %v466_v24 }
 0x123   :  { %v216_v52 = vpop.f32.mrf.mxu1 }
 0x124   :  { %v217_v53 = vadd.f32 %v981_v51, %v216_v52 }
 0x126   :  { %v220_v54 = vmax.f32 %v217_v53, 0.0 }
 0x128   :  { %516 = vst [vmem:[#allocation2] sm:$0xff] %v220_v54  ;;  %v221_v55 = vpack.c.bf16 %v220_v54, %v220_v54 }
 0x12a   :  { %301 = vmatmul.bf16.vlgmr.msra.gmra.mxu2 %v221_v55  ;;  %667 = vmatmul.bf16.vlgmr.msrb.gmra.mxu1 %v221_v55 }
 0x12b   :  { %v218_v56 = vpop.f32.mrf.mxu1  ;;  %509 = vmatpush.bf16.msra.mxu2 %v498_v27 }
 0x1a7   :  { %v1240_v63 = vpop.f32.mrf.mxu1 }
 0x1ad   :  { %v302_v1 = vpop.f32.mrf.mxu2 }
 0x1ae   :  { %v303_v2 = vadd.f32 %v983_v0, %v302_v1 }
 0x1af   :  { %v670_v3 = vpop.f32.mrf.mxu1 }
 0x1b0   :  { %v470_v4 = vpack.c.bf16 %v303_v2, %v303_v2 }
 0x1b2   :  { %480 = vmatmul.bf16.vlgmr.msrb.gmra.mxu2 %v470_v4 }
 0x1b5   :  { %v304_v5 = vpop.f32.mrf.mxu2 }
 0x235   :  { %v481_v13 = vpop.f32.mrf.mxu2 }
 0x236   :  { %v486_v14 = vsel %vm485_vm0, %v481_v13, -inf }
 0x237   :  { %487 = vmax.xlane.f32.xlu0 %v486_v14 }
 0x23d   :  { %v483_v16 = vpop.f32.mrf.mxu2 }
 0x2aa   :  { %v488_v17 = vpop.xlane.xlu0 %487 }
 0x2ab   :  { %v489_v18 = vsub.f32 %v481_v13, %v488_v17 }
 0x2ad   :  { %v490_v19 = vmul.f32 1.442695, %v489_v18 }
 0x2af   :  { %986 = vpow2.f32 %v490_v19 }
 0x2b5   :  { %v987_v20 = vpop.eup %986 }
 0x2b6   :  { %v492_v21 = vsel %vm485_vm0, %v987_v20, 0.0 }
 0x2b7   :  { %493 = vadd.xlane.f32.xlu0 %v492_v21 }
 0x32a   :  { %v494_v34 = vpop.xlane.xlu0 %493 }
 0x32b   :  { %988 = vrcp.f32 %v494_v34 }
 0x331   :  { %v989_v36 = vpop.eup %988 }
 0x332   :  { %v496_v37 = vmul.f32 %v989_v36, %v987_v20 }
 0x334   :  { %v497_v38 = vpack.c.bf16 %v496_v37, %v496_v37 }
 0x336   :  { %858 = vmatmul.msk.bf16.vlgmr.msra.gmra.mxu2 %vm485_vm0, %v497_v38 }
 0x3b9   :  { %v511_v40 = vpop.f32.mrf.mxu2 }
 0x3ba   :  { %v515_v41 = vpack.c.bf16 %v511_v40, %v511_v40  ;;  %517 = vst [vmem:[#allocation2 + $0x8] sm:$0xff] %v511_v40 }
 0x3bb   :  { %688 = dma.vmem_to_hbm [thread:$0]  %s684_s4, 256, %s686_s20, [#allocation3]  }
 0x3bc   :  { %606 = vmatmul.bf16.vlgmr.msrb.gmra.mxu3 %v515_v41 }
 0x3c1   :  { %v513_v42 = vpop.f32.mrf.mxu2 }
 0x43f   :  { %v607_v44 = vpop.f32.mrf.mxu3 }
 0x440   :  { %v669_v45 = vadd.f32 %v1240_v63, %v607_v44 }
 0x442   :  { %v676_v46 = vadd.f32 %v985_v43, %v669_v45 }
 0x444   :  { %677 = vst [vmem:[%s1325_s16] sm:$0xff] %v676_v46 }
 0x447   :  { %v609_v47 = vpop.f32.mrf.mxu3 }
 0x448   :  { %1014 = dma.done.wait [#allocation3], 256  }
 0x449   :  { %1015 = vsyncadd [#allocation3], 4294967040 }
 0x44a   :  { %697 = vsyncpa [#allocation3], 1 }

</bundles_post_ra>
